<compile_context>
chip_gen: v5e
topology: v5e:2x2
jax: 0.10.0
libtpu: 0.0.40
codegen_flags: <defaults>
</compile_context>

<pallas_src>
import jax
import jax.numpy as jnp
from jax.experimental import pallas as pl
from jax.experimental.pallas import tpu as pltpu

EPS = 1e-5


# ----------------------------------------------------------------------------
# Kernel
# ----------------------------------------------------------------------------
def _make_kernel(Bt, H, WC):
    """Fused kernel for a (Bt, H, W*C) lane-dense activation block."""
    M = Bt * H

    def _conv3x3_instnorm(x3, band_ref, g):
        # x3: (Bt, H, WC) f32.  band_ref: (3, WC, WC) ref.  g: (WC, WC) f32.
        # H-direction reflection (ReflectionPad2d(1)): rows h-1 / h / h+1.
        top = jnp.concatenate([x3[:, 1:2], x3[:, :H - 1]], axis=1)        # row h-1
        bot = jnp.concatenate([x3[:, 1:], x3[:, H - 2:H - 1]], axis=1)    # row h+1
        acc = (jnp.dot(top.reshape(M, WC), band_ref[0],
                       preferred_element_type=jnp.float32)
               + jnp.dot(x3.reshape(M, WC), band_ref[1],
                         preferred_element_type=jnp.float32)
               + jnp.dot(bot.reshape(M, WC), band_ref[2],
                         preferred_element_type=jnp.float32))
        acc3 = acc.reshape(Bt, H, WC)

        # Single-pass InstanceNorm statistics (f32): sum & sum-of-squares over H
        # (sublane reduce), then cross-w reduce + per-channel lane broadcast in a
        # single MXU matmul against G (G already carries the 1/(H*W) factor).
        s1 = jnp.sum(acc3, axis=1)                                        # (Bt, WC)
        s2 = jnp.sum(acc3 * acc3, axis=1)                                 # (Bt, WC)
        mean = jnp.dot(s1, g, preferred_element_type=jnp.float32)         # (Bt, WC)
        ex2 = jnp.dot(s2, g, preferred_element_type=jnp.float32)          # (Bt, WC)
        var = jnp.maximum(ex2 - mean * mean, 0.0)                         # clamp >= 0
        inv = jax.lax.rsqrt(var + EPS)
        return (acc3 - mean[:, None, :]) * inv[:, None, :]

    def kernel(x_ref, b1_ref, b2_ref, g_ref, o_ref):
        x3 = x_ref[...].astype(jnp.float32)                               # (Bt, H, WC)
        g = g_ref[...]
        y1 = jnp.maximum(_conv3x3_instnorm(x3, b1_ref, g), 0.0)           # ReLU
        y2 = _conv3x3_instnorm(y1, b2_ref, g)
        o_ref[...] = (x3 + y2).astype(o_ref.dtype)                        # residual

    return kernel


# ----------------------------------------------------------------------------
# Wrapper-side weight packing
# ----------------------------------------------------------------------------
def _band_matrices(w_oihw, W):
    """(O, I, 3, 3) -> (3, W*I, W*O) f32 band matrices.

    bands[dy][w_src*I + ci, w_out*O + co] accumulates w[co, ci, dy, dxk] for all
    dxk with reflect(w_out + dxk - 1) == w_src, i.e. dx offsets, channel mixing
    and the W-direction ReflectionPad2d(1) are all baked in.
    """
    O, I, _, _ = w_oihw.shape
    w = w_oihw.astype(jnp.float32)
    bands = []
    for dy in range(3):
        b = jnp.zeros((W * I, W * O), jnp.float32)
        for w_out in range(W):
            for dxk in range(3):
                w_src = w_out + dxk - 1
                if w_src < 0:
                    w_src = 1                 # reflect left edge
                elif w_src > W - 1:
                    w_src = W - 2             # reflect right edge
                blk = jnp.transpose(w[:, :, dy, dxk])      # (I, O) = [ci, co]
                b = b.at[w_src * I:(w_src + 1) * I,
                         w_out * O:(w_out + 1) * O].add(blk)
        bands.append(b)
    return jnp.stack(bands)                                 # (3, W*I, W*O)


def _choose_bt(B):
    """Images per grid step; keep >= 2 grid steps so v7x's 2 TCs both get work."""
    for bt in (8, 4, 2):
        if B % bt == 0 and B // bt >= 2:
            return bt
    return 1


# ----------------------------------------------------------------------------
# Forward wrappers
# ----------------------------------------------------------------------------
def resnet_block_forward_nhwc(x_nhwc, w1, b1, w2, b2):
    """Preferred entry point: x in NHWC. No wrapper transposes (reshapes only)."""
    # Conv biases are cancelled exactly by the affine-free InstanceNorm mean
    # subtraction that immediately follows each conv.
    del b1, b2
    B, H, W, C = x_nhwc.shape
    assert H >= 2 and W >= 2, "ReflectionPad2d(1) needs H, W >= 2"
    WC = W * C
    x_flat = x_nhwc.reshape(B, H, WC)                       # pure reshape, no relayout

    bands1 = _band_matrices(w1, W)                          # (3, WC, WC), f32
    bands2 = _band_matrices(w2, W)
    g = jnp.tile(jnp.eye(C, dtype=jnp.float32), (W, W)) / float(H * W)   # (WC, WC)

    Bt = _choose_bt(B)
    kernel = _make_kernel(Bt, H, WC)

    out = pl.pallas_call(
        kernel,
        out_shape=jax.ShapeDtypeStruct((B, H, WC), x_nhwc.dtype),
        grid_spec=pltpu.PrefetchScalarGridSpec(
            num_scalar_prefetch=0,
            grid=(B // Bt,),
            in_specs=[
                pl.BlockSpec((Bt, H, WC), lambda b: (b, 0, 0)),   # activations
                pl.BlockSpec((3, WC, WC), lambda b: (0, 0, 0)),   # conv1 bands (resident)
                pl.BlockSpec((3, WC, WC), lambda b: (0, 0, 0)),   # conv2 bands (resident)
                pl.BlockSpec((WC, WC), lambda b: (0, 0)),         # IN group matrix G
            ],
            out_specs=pl.BlockSpec((Bt, H, WC), lambda b: (b, 0, 0)),
        ),
        compiler_params=pltpu.CompilerParams(
            dimension_semantics=("parallel",),
        ),
    )(x_flat, bands1, bands2, g)

    return out.reshape(B, H, W, C)


def resnet_block_forward(x_nchw, w1, b1, w2, b2):
    """NCHW adapter matching the PyTorch module layout.

    Prefer resnet_block_forward_nhwc: the two transposes here each add a full
    HBM read+write of the activation around the otherwise 1-read/1-write kernel.
    """
    x = jnp.transpose(x_nchw, (0, 2, 3, 1))                 # NCHW -> NHWC
    out = resnet_block_forward_nhwc(x, w1, b1, w2, b2)
    return jnp.transpose(out, (0, 3, 1, 2))                 # NHWC -> NCHW


# ----------------------------------------------------------------------------
# Pure-JAX reference (lax conv, bias included) for the correctness check
# ----------------------------------------------------------------------------
def _reference_forward(x_nchw, w1, b1, w2, b2):
    x = jnp.transpose(x_nchw, (0, 2, 3, 1))

    def conv(h, w, b):
        hp = jnp.pad(h, ((0, 0), (1, 1), (1, 1), (0, 0)), mode="reflect")
        y = jax.lax.conv_general_dilated(
            hp, w, window_strides=(1, 1), padding="VALID",
            dimension_numbers=("NHWC", "OIHW", "NHWC"))
        return y + b[None, None, None, :]

    def inorm(h):
        m = jnp.mean(h, axis=(1, 2), keepdims=True)
        v = jnp.mean((h - m) ** 2, axis=(1, 2), keepdims=True)
        return (h - m) * jax.lax.rsqrt(v + EPS)

    h = jnp.maximum(inorm(conv(x, w1, b1)), 0.0)
    h = inorm(conv(h, w2, b2))
    return jnp.transpose(x + h, (0, 3, 1, 2))


if __name__ == "__main__":
    key = jax.random.PRNGKey(0)
    B, dim, H, W = 2, 8, 16, 16                             # W*dim = 128 -> lane-dense

    k_x, k_w1, k_b1, k_w2, k_b2 = jax.random.split(key, 5)
    x = jax.random.normal(k_x, (B, dim, H, W), jnp.float32)

    # Deterministic init, PyTorch Conv2d default-ish scale (fan_in = dim*3*3)
    bound = 1.0 / (dim * 9) ** 0.5
    w1 = jax.random.uniform(k_w1, (dim, dim, 3, 3), jnp.float32, -bound, bound)
    b1 = jax.random.uniform(k_b1, (dim,), jnp.float32, -bound, bound)
    w2 = jax.random.uniform(k_w2, (dim, dim, 3, 3), jnp.float32, -bound, bound)
    b2 = jax.random.uniform(k_b2, (dim,), jnp.float32, -bound, bound)

    out = resnet_block_forward(x, w1, b1, w2, b2)
    out = jax.block_until_ready(out)

    ref = _reference_forward(x, w1, b1, w2, b2)
    assert out.shape == (B, dim, H, W)
    assert jnp.allclose(out, ref, atol=1e-4, rtol=1e-4), "mismatch vs JAX reference"

    print("KERNEL_OK")
</pallas_src>

<mosaic_0001>
module attributes {stable_mosaic.version = 11 : i64} {
  func.func @kernel(%arg0: i32, %arg1: memref<1x16x128xf32, #tpu.memory_space<vmem>>, %arg2: memref<3x128x128xf32, #tpu.memory_space<vmem>>, %arg3: memref<3x128x128xf32, #tpu.memory_space<vmem>>, %arg4: memref<128x128xf32, #tpu.memory_space<vmem>>, %arg5: memref<1x16x128xf32, #tpu.memory_space<vmem>>) attributes {dimension_semantics = [#tpu.dimension_semantics<parallel>], iteration_bounds = array<i64: 2>, scalar_prefetch = 0 : i64, scratch_operands = 0 : i64, tpu.core_type = #tpu.core_type<tc>, window_params = [{transform_indices = @transform_0, window_bounds = array<i64: 1, 16, 128>}, {pipeline_mode = #tpu.pipeline_mode<synchronous>, transform_indices = @transform_1, window_bounds = array<i64: 3, 128, 128>}, {pipeline_mode = #tpu.pipeline_mode<synchronous>, transform_indices = @transform_2, window_bounds = array<i64: 3, 128, 128>}, {pipeline_mode = #tpu.pipeline_mode<synchronous>, transform_indices = @transform_3, window_bounds = array<i64: 128, 128>}, {transform_indices = @transform_4, window_bounds = array<i64: 1, 16, 128>}]} {
    %c0 = arith.constant 0 : index
    %c0_0 = arith.constant 0 : index
    %c0_1 = arith.constant 0 : index
    %0 = vector.load %arg1[%c0, %c0_0, %c0_1] : memref<1x16x128xf32, #tpu.memory_space<vmem>>, vector<1x16x128xf32>
    %c0_2 = arith.constant 0 : index
    %c0_3 = arith.constant 0 : index
    %1 = vector.load %arg4[%c0_2, %c0_3] : memref<128x128xf32, #tpu.memory_space<vmem>>, vector<128x128xf32>
    %2 = vector.extract_strided_slice %0 {offsets = [0, 1, 0], sizes = [1, 1, 128], strides = [1, 1, 1]} : vector<1x16x128xf32> to vector<1x1x128xf32>
    %3 = vector.extract_strided_slice %0 {offsets = [0, 0, 0], sizes = [1, 15, 128], strides = [1, 1, 1]} : vector<1x16x128xf32> to vector<1x15x128xf32>
    %4 = tpu.concatenate %2, %3 in 1 : vector<1x1x128xf32>, vector<1x15x128xf32> -> vector<1x16x128xf32>
    %5 = vector.extract_strided_slice %0 {offsets = [0, 1, 0], sizes = [1, 15, 128], strides = [1, 1, 1]} : vector<1x16x128xf32> to vector<1x15x128xf32>
    %6 = vector.extract_strided_slice %0 {offsets = [0, 14, 0], sizes = [1, 1, 128], strides = [1, 1, 1]} : vector<1x16x128xf32> to vector<1x1x128xf32>
    %7 = tpu.concatenate %5, %6 in 1 : vector<1x15x128xf32>, vector<1x1x128xf32> -> vector<1x16x128xf32>
    %8 = vector.shape_cast %4 : vector<1x16x128xf32> to vector<16x128xf32>
    %c0_4 = arith.constant 0 : index
    %c0_5 = arith.constant 0 : index
    %c0_6 = arith.constant 0 : index
    %9 = vector.load %arg2[%c0_4, %c0_5, %c0_6] : memref<3x128x128xf32, #tpu.memory_space<vmem>>, vector<1x128x128xf32>
    %10 = vector.shape_cast %9 : vector<1x128x128xf32> to vector<128x128xf32>
    %cst = arith.constant dense<0.000000e+00> : vector<16x128xf32>
    %11 = tpu.matmul %8, %10, %cst {dimension_numbers = #tpu.dot_dimension_numbers<[1], [0], [0], [1], [0, 0, 1, 1], [], []>} : vector<16x128xf32>, vector<128x128xf32>, vector<16x128xf32> -> vector<16x128xf32>
    %12 = vector.shape_cast %0 : vector<1x16x128xf32> to vector<16x128xf32>
    %c1 = arith.constant 1 : index
    %c0_7 = arith.constant 0 : index
    %c0_8 = arith.constant 0 : index
    %13 = vector.load %arg2[%c1, %c0_7, %c0_8] : memref<3x128x128xf32, #tpu.memory_space<vmem>>, vector<1x128x128xf32>
    %14 = vector.shape_cast %13 : vector<1x128x128xf32> to vector<128x128xf32>
    %cst_9 = arith.constant dense<0.000000e+00> : vector<16x128xf32>
    %15 = tpu.matmul %12, %14, %cst_9 {dimension_numbers = #tpu.dot_dimension_numbers<[1], [0], [0], [1], [0, 0, 1, 1], [], []>} : vector<16x128xf32>, vector<128x128xf32>, vector<16x128xf32> -> vector<16x128xf32>
    %16 = arith.addf %11, %15 : vector<16x128xf32>
    %17 = vector.shape_cast %7 : vector<1x16x128xf32> to vector<16x128xf32>
    %c2 = arith.constant 2 : index
    %c0_10 = arith.constant 0 : index
    %c0_11 = arith.constant 0 : index
    %18 = vector.load %arg2[%c2, %c0_10, %c0_11] : memref<3x128x128xf32, #tpu.memory_space<vmem>>, vector<1x128x128xf32>
    %19 = vector.shape_cast %18 : vector<1x128x128xf32> to vector<128x128xf32>
    %cst_12 = arith.constant dense<0.000000e+00> : vector<16x128xf32>
    %20 = tpu.matmul %17, %19, %cst_12 {dimension_numbers = #tpu.dot_dimension_numbers<[1], [0], [0], [1], [0, 0, 1, 1], [], []>} : vector<16x128xf32>, vector<128x128xf32>, vector<16x128xf32> -> vector<16x128xf32>
    %21 = arith.addf %16, %20 : vector<16x128xf32>
    %22 = vector.shape_cast %21 : vector<16x128xf32> to vector<1x16x128xf32>
    %cst_13 = arith.constant dense<0.000000e+00> : vector<1x128xf32>
    %23 = vector.multi_reduction <add>, %22, %cst_13 [1] : vector<1x16x128xf32> to vector<1x128xf32>
    %24 = arith.mulf %22, %22 : vector<1x16x128xf32>
    %cst_14 = arith.constant dense<0.000000e+00> : vector<1x128xf32>
    %25 = vector.multi_reduction <add>, %24, %cst_14 [1] : vector<1x16x128xf32> to vector<1x128xf32>
    %cst_15 = arith.constant dense<0.000000e+00> : vector<1x128xf32>
    %26 = tpu.matmul %23, %1, %cst_15 {dimension_numbers = #tpu.dot_dimension_numbers<[1], [0], [0], [1], [0, 0, 1, 1], [], []>} : vector<1x128xf32>, vector<128x128xf32>, vector<1x128xf32> -> vector<1x128xf32>
    %cst_16 = arith.constant dense<0.000000e+00> : vector<1x128xf32>
    %27 = tpu.matmul %25, %1, %cst_16 {dimension_numbers = #tpu.dot_dimension_numbers<[1], [0], [0], [1], [0, 0, 1, 1], [], []>} : vector<1x128xf32>, vector<128x128xf32>, vector<1x128xf32> -> vector<1x128xf32>
    %28 = arith.mulf %26, %26 : vector<1x128xf32>
    %29 = arith.subf %27, %28 : vector<1x128xf32>
    %cst_17 = arith.constant 0.000000e+00 : f32
    %30 = vector.broadcast %cst_17 : f32 to vector<1x128xf32>
    %31 = arith.maximumf %29, %30 : vector<1x128xf32>
    %cst_18 = arith.constant 9.99999974E-6 : f32
    %32 = vector.broadcast %cst_18 : f32 to vector<1x128xf32>
    %33 = arith.addf %31, %32 : vector<1x128xf32>
    %34 = math.rsqrt %33 : vector<1x128xf32>
    %35 = vector.shape_cast %26 : vector<1x128xf32> to vector<1x1x128xf32>
    %36 = vector.broadcast %35 : vector<1x1x128xf32> to vector<1x16x128xf32>
    %37 = arith.subf %22, %36 : vector<1x16x128xf32>
    %38 = vector.shape_cast %34 : vector<1x128xf32> to vector<1x1x128xf32>
    %39 = vector.broadcast %38 : vector<1x1x128xf32> to vector<1x16x128xf32>
    %40 = arith.mulf %37, %39 : vector<1x16x128xf32>
    %cst_19 = arith.constant 0.000000e+00 : f32
    %41 = vector.broadcast %cst_19 : f32 to vector<1x16x128xf32>
    %42 = arith.maximumf %40, %41 : vector<1x16x128xf32>
    %43 = vector.extract_strided_slice %42 {offsets = [0, 1, 0], sizes = [1, 1, 128], strides = [1, 1, 1]} : vector<1x16x128xf32> to vector<1x1x128xf32>
    %44 = vector.extract_strided_slice %42 {offsets = [0, 0, 0], sizes = [1, 15, 128], strides = [1, 1, 1]} : vector<1x16x128xf32> to vector<1x15x128xf32>
    %45 = tpu.concatenate %43, %44 in 1 : vector<1x1x128xf32>, vector<1x15x128xf32> -> vector<1x16x128xf32>
    %46 = vector.extract_strided_slice %42 {offsets = [0, 1, 0], sizes = [1, 15, 128], strides = [1, 1, 1]} : vector<1x16x128xf32> to vector<1x15x128xf32>
    %47 = vector.extract_strided_slice %42 {offsets = [0, 14, 0], sizes = [1, 1, 128], strides = [1, 1, 1]} : vector<1x16x128xf32> to vector<1x1x128xf32>
    %48 = tpu.concatenate %46, %47 in 1 : vector<1x15x128xf32>, vector<1x1x128xf32> -> vector<1x16x128xf32>
    %49 = vector.shape_cast %45 : vector<1x16x128xf32> to vector<16x128xf32>
    %c0_20 = arith.constant 0 : index
    %c0_21 = arith.constant 0 : index
    %c0_22 = arith.constant 0 : index
    %50 = vector.load %arg3[%c0_20, %c0_21, %c0_22] : memref<3x128x128xf32, #tpu.memory_space<vmem>>, vector<1x128x128xf32>
    %51 = vector.shape_cast %50 : vector<1x128x128xf32> to vector<128x128xf32>
    %cst_23 = arith.constant dense<0.000000e+00> : vector<16x128xf32>
    %52 = tpu.matmul %49, %51, %cst_23 {dimension_numbers = #tpu.dot_dimension_numbers<[1], [0], [0], [1], [0, 0, 1, 1], [], []>} : vector<16x128xf32>, vector<128x128xf32>, vector<16x128xf32> -> vector<16x128xf32>
    %53 = vector.shape_cast %42 : vector<1x16x128xf32> to vector<16x128xf32>
    %c1_24 = arith.constant 1 : index
    %c0_25 = arith.constant 0 : index
    %c0_26 = arith.constant 0 : index
    %54 = vector.load %arg3[%c1_24, %c0_25, %c0_26] : memref<3x128x128xf32, #tpu.memory_space<vmem>>, vector<1x128x128xf32>
    %55 = vector.shape_cast %54 : vector<1x128x128xf32> to vector<128x128xf32>
    %cst_27 = arith.constant dense<0.000000e+00> : vector<16x128xf32>
    %56 = tpu.matmul %53, %55, %cst_27 {dimension_numbers = #tpu.dot_dimension_numbers<[1], [0], [0], [1], [0, 0, 1, 1], [], []>} : vector<16x128xf32>, vector<128x128xf32>, vector<16x128xf32> -> vector<16x128xf32>
    %57 = arith.addf %52, %56 : vector<16x128xf32>
    %58 = vector.shape_cast %48 : vector<1x16x128xf32> to vector<16x128xf32>
    %c2_28 = arith.constant 2 : index
    %c0_29 = arith.constant 0 : index
    %c0_30 = arith.constant 0 : index
    %59 = vector.load %arg3[%c2_28, %c0_29, %c0_30] : memref<3x128x128xf32, #tpu.memory_space<vmem>>, vector<1x128x128xf32>
    %60 = vector.shape_cast %59 : vector<1x128x128xf32> to vector<128x128xf32>
    %cst_31 = arith.constant dense<0.000000e+00> : vector<16x128xf32>
    %61 = tpu.matmul %58, %60, %cst_31 {dimension_numbers = #tpu.dot_dimension_numbers<[1], [0], [0], [1], [0, 0, 1, 1], [], []>} : vector<16x128xf32>, vector<128x128xf32>, vector<16x128xf32> -> vector<16x128xf32>
    %62 = arith.addf %57, %61 : vector<16x128xf32>
    %63 = vector.shape_cast %62 : vector<16x128xf32> to vector<1x16x128xf32>
    %cst_32 = arith.constant dense<0.000000e+00> : vector<1x128xf32>
    %64 = vector.multi_reduction <add>, %63, %cst_32 [1] : vector<1x16x128xf32> to vector<1x128xf32>
    %65 = arith.mulf %63, %63 : vector<1x16x128xf32>
    %cst_33 = arith.constant dense<0.000000e+00> : vector<1x128xf32>
    %66 = vector.multi_reduction <add>, %65, %cst_33 [1] : vector<1x16x128xf32> to vector<1x128xf32>
    %cst_34 = arith.constant dense<0.000000e+00> : vector<1x128xf32>
    %67 = tpu.matmul %64, %1, %cst_34 {dimension_numbers = #tpu.dot_dimension_numbers<[1], [0], [0], [1], [0, 0, 1, 1], [], []>} : vector<1x128xf32>, vector<128x128xf32>, vector<1x128xf32> -> vector<1x128xf32>
    %cst_35 = arith.constant dense<0.000000e+00> : vector<1x128xf32>
    %68 = tpu.matmul %66, %1, %cst_35 {dimension_numbers = #tpu.dot_dimension_numbers<[1], [0], [0], [1], [0, 0, 1, 1], [], []>} : vector<1x128xf32>, vector<128x128xf32>, vector<1x128xf32> -> vector<1x128xf32>
    %69 = arith.mulf %67, %67 : vector<1x128xf32>
    %70 = arith.subf %68, %69 : vector<1x128xf32>
    %cst_36 = arith.constant 0.000000e+00 : f32
    %71 = vector.broadcast %cst_36 : f32 to vector<1x128xf32>
    %72 = arith.maximumf %70, %71 : vector<1x128xf32>
    %cst_37 = arith.constant 9.99999974E-6 : f32
    %73 = vector.broadcast %cst_37 : f32 to vector<1x128xf32>
    %74 = arith.addf %72, %73 : vector<1x128xf32>
    %75 = math.rsqrt %74 : vector<1x128xf32>
    %76 = vector.shape_cast %67 : vector<1x128xf32> to vector<1x1x128xf32>
    %77 = vector.broadcast %76 : vector<1x1x128xf32> to vector<1x16x128xf32>
    %78 = arith.subf %63, %77 : vector<1x16x128xf32>
    %79 = vector.shape_cast %75 : vector<1x128xf32> to vector<1x1x128xf32>
    %80 = vector.broadcast %79 : vector<1x1x128xf32> to vector<1x16x128xf32>
    %81 = arith.mulf %78, %80 : vector<1x16x128xf32>
    %82 = arith.addf %0, %81 : vector<1x16x128xf32>
    %c0_38 = arith.constant 0 : index
    %c0_39 = arith.constant 0 : index
    %c0_40 = arith.constant 0 : index
    %83 = vector.load %arg5[%c0_38, %c0_39, %c0_40] : memref<1x16x128xf32, #tpu.memory_space<vmem>>, vector<1x16x128xf32>
    tpu.vector_store %arg5[%c0_38, %c0_39, %c0_40], %82 {strides = array<i32>} : memref<1x16x128xf32, #tpu.memory_space<vmem>>, vector<1x16x128xf32>,
    return
  }
  func.func @transform_0(%arg0: i32) -> (i32, i32, i32) {
    %c0_i32 = arith.constant 0 : i32
    %c0_i32_0 = arith.constant 0 : i32
    %c0_i32_1 = arith.constant 0 : i32
    return %arg0, %c0_i32, %c0_i32_0 : i32, i32, i32
  }
  func.func @transform_1(%arg0: i32) -> (i32, i32, i32) {
    %c0_i32 = arith.constant 0 : i32
    %c0_i32_0 = arith.constant 0 : i32
    %c0_i32_1 = arith.constant 0 : i32
    %c0_i32_2 = arith.constant 0 : i32
    return %c0_i32, %c0_i32_0, %c0_i32_1 : i32, i32, i32
  }
  func.func @transform_2(%arg0: i32) -> (i32, i32, i32) {
    %c0_i32 = arith.constant 0 : i32
    %c0_i32_0 = arith.constant 0 : i32
    %c0_i32_1 = arith.constant 0 : i32
    %c0_i32_2 = arith.constant 0 : i32
    return %c0_i32, %c0_i32_0, %c0_i32_1 : i32, i32, i32
  }
  func.func @transform_3(%arg0: i32) -> (i32, i32) {
    %c0_i32 = arith.constant 0 : i32
    %c0_i32_0 = arith.constant 0 : i32
    %c0_i32_1 = arith.constant 0 : i32
    return %c0_i32, %c0_i32_0 : i32, i32
  }
  func.func @transform_4(%arg0: i32) -> (i32, i32, i32) {
    %c0_i32 = arith.constant 0 : i32
    %c0_i32_0 = arith.constant 0 : i32
    %c0_i32_1 = arith.constant 0 : i32
    return %arg0, %c0_i32, %c0_i32_0 : i32, i32, i32
  }
}

</mosaic_0001>

<bundles_post_ra>
// kernel: tpu_custom_call.1
= control target key start
LH: loop header
LB: loop body
LE: loop exit
PB: predicated region body
PF: predicated region fallthrough
CT: control target
= control target key end

     0   :  { %9 = vsyncpa [#allocation3], 0  ;;  %s1479_s0 = inlined_call_operand.hbm [shape: f32[2,16,128], index: 0, kind: input, shape index: {}]   ;;  %s1480_s1 = inlined_call_operand.hbm [shape: f32[3,128,128], index: 1, kind: input, shape index: {}]   ;;  %s1481_s2 = inlined_call_operand.hbm [shape: f32[3,128,128], index: 2, kind: input, shape index: {}]   ;;  %s1482_s3 = inlined_call_operand.hbm [shape: f32[128,128], index: 3, kind: input, shape index: {}]   ;;  %s1483_s4 = inlined_call_operand.hbm [shape: f32[2,16,128], index: 4, kind: output, shape index: {}]  }
   0x1   :  { %11 = vsyncpa [#allocation3 + $0x1], 0 }
   0x2   :  { %12 = vsyncpa [#allocation6], 0 }
   0x3   :  { %13 = vsyncpa [#allocation9], 0 }
   0x4   :  { %14 = vsyncpa [#allocation4], 0 }
   0x5   :  { %16 = vsyncpa [#allocation4 + $0x1], 0  ;;  %s1173_s15 = smov 0   ;;  %s1175_s16 = smov 0  }
   0x6   :  { %s1177_s17 = smov 0   ;;  %s1179_s18 = smov 0  }
   0x7 LB: > { %s1194_s19 = sadd.s32 4294967295, %s1139_s18   ;;  %s838_s20 = sadd.s32 4294967294, %s1139_s18   ;;  %s1139_s18 = sphi %s1179_s18, %s1494_s18   ;;  %s1135_s17 = sphi %s1177_s17, %s1493_s17   ;;  %s1131_s16 = sphi %s1175_s16, %s1492_s16   ;;  %s1127_s15 = sphi %s1173_s15, %s1491_s15  }
   0x8   : > { %p42_p0 = scmp.ne.s32.totalorder %s1131_s16, %s1127_s15  ;;  %p43_p1 = scmp.eq.s32.totalorder %s1194_s19, 0 }
   0x9   : > { %p129_p2 = scmp.eq.s32.totalorder %s1194_s19, 1  ;;  %p135_p3 = scmp.eq.s32.totalorder %s838_s20, 1 }
   0xa   : > { %p1203_p4 = por %p43_p1, %p42_p0  ;;  %p839_p5 = scmp.ge.s32.totalorder %s1139_s18, 1 }
   0xb   : > { %p1208_p6 = por %p135_p3, %p42_p0  ;;  %p142_p7 = scmp.lt.s32.totalorder %s1139_s18, 3 }
   0xc   : > { %s153_s25 = sshll.u32 %s1480_s1, 4  ;;  %s1141_s27 = smov [#allocation5]   ;;  %s154_s25 = int_to_ptr.hbm [resolvable:$true] %s153_s25 }
   0xd   : > { %p1216_p8 = pnand %p839_p5, %p142_p7  ;;  %s155_s28 = sshll.u32 %s1141_s27, 4  ;;  %s156_s28 = int_to_ptr.vmem [resolvable:$true] %s155_s28 }
   0xe   : > { %s167_s6 = sshll.u32 %s1481_s2, 4  ;;  %s1142_s7 = smov 128   ;;  %s168_s6 = int_to_ptr.hbm [resolvable:$true] %s167_s6 }
   0xf   : > { %p876_p9 = pneg %p1216_p8  ;;  %s1143_s8 = smov 8  }
  0x10   : > { %s1144_s9 = smov [#allocation7]   ;;  %s181_s13 = sshll.u32 %s1482_s3, 4  ;;  %s182_s13 = int_to_ptr.hbm [resolvable:$true] %s181_s13 }
  0x11   : > { %p1224_p10 = pnand %p876_p9, %p43_p1  ;;  %s169_s10 = sshll.u32 %s1144_s9, 4  ;;  %s170_s10 = int_to_ptr.vmem [resolvable:$true] %s169_s10 }
  0x12   : > { %s1145_s14 = smov [#allocation8]   ;;  %s1246_s23 = sadd.s32 1, %s1139_s18  }
  0x13   : > { %879 = dma.hbm_to_vmem [thread:$0]  (!%p1224_p10), %s154_s25, 6144, %s156_s28, [#allocation6], %s1142_s7, %s1142_s7, %s1143_s8  }
  0x14   : > { %882 = dma.hbm_to_vmem [thread:$0]  (!%p1224_p10), %s168_s6, 6144, %s170_s10, [#allocation6], %s1142_s7, %s1142_s7, %s1143_s8  }
  0x15   : > { %s183_s20 = sshll.u32 %s1145_s14, 4  ;;  %s26_s24 = ssub.s32 %s1139_s18, %s1246_s23  ;;  %s184_s20 = int_to_ptr.vmem [resolvable:$true] %s183_s20 }
  0x16   : > { %885 = dma.hbm_to_vmem [thread:$0]  (!%p1224_p10), %s182_s13, 2048, %s184_s20, [#allocation9], %s1142_s7, %s1142_s7, %s1143_s8  }
  0x17   : > { %s29_s25 = sadd.s32 1, %s1135_s17  ;;  %p27_p12 = scmp.eq.s32.totalorder %s26_s24, 0 }
  0x18   : > { %p36_p13 = scmp.ne.s32.totalorder %s1135_s17, %s1131_s16  ;;  %p37_p0 = scmp.eq.s32.totalorder %s1139_s18, 0 }
  0x19   : > { %s1260_s27 = scalar_select %p27_p12, %s1135_s17, %s29_s25  }
  0x1a   : > { %p1264_p3 = por %p129_p2, %p36_p13  ;;  %p897_p5 = scmp.lt.s32.totalorder %s1139_s18, 2 }
  0x1b   : > { %s197_s30 = sand.u32 1, %s1135_s17   ;;  %s858_s29 = sshll.u32 %s1139_s18, 4 }
  0x1c   : > { %p38_p7 = por %p37_p0, %p36_p13  ;;  %s844_s5 = sshll.u32 %s197_s30, 4 }
  0x1d   : > { %s206_s10 = scalar_lea.hbm %s1479_s0, %s858_s29  ;;  %s201_s12 = scalar_lea.vmem [#allocation2], %s844_s5 }
  0x1e   : > { %s207_s11 = sshll.u32 %s206_s10, 4  ;;  %s209_s13 = sshll.u32 %s201_s12, 4  ;;  %s208_s11 = int_to_ptr.hbm [resolvable:$true] %s207_s11  ;;  %s210_s13 = int_to_ptr.vmem [resolvable:$true] %s209_s13 }
  0x1f   : > { %p1274_p9 = pnand %p897_p5, %p38_p7  ;;  %s198_s20 = scalar_lea.sflag [#allocation3], %s197_s30 }
  0x20   : > { %s1035_s24 = sshra.s32 %s208_s11, 4  ;;  %s1042_s5 = scalar_lea.hbm %s1479_s0, 32  ;;  %s1036_s24 = int_to_ptr.hbm [resolvable:$true] %s1035_s24 }
  0x21   : > { %s1037_s25 = scalar_lea.hbm %s1036_s24, 16  ;;  %p1039_p10 = pneg %p1274_p9 }
  0x22   : > { %p1038_p2 = scmp.ne.s32.totalorder %s1036_s24, %s1037_s25  ;;  %p1043_p0 = scmp.lt.s32.totalorder %s1036_s24, %s1479_s0 }
  0x23   : > { %p1044_p5 = scmp.lt.s32.totalorder %s1042_s5, %s1037_s25 }
  0x24   : > { %p1040_p12 = pnand %p1039_p10, %p1038_p2 }
  0x25   : > { %p1045_p7 = por %p1044_p5, %p1043_p0 }
  0x26   : > { %p1041_p13 = pneg %p1040_p12 }
  0x28   : > { %p1046_p11 = pnand %p1045_p7, %p1041_p13 }
  0x2a   : > { %1049 = shalt.err (!%p1046_p11)
}
  0x2b   : > { %889 = dma.hbm_to_vmem [thread:$0]  (!%p1274_p9), %s208_s11, 256, %s210_s13, %s198_s20, %s1142_s7, %s1142_s7, %s1143_s8  }
  0x2c   : > { %221 = sbr.rel (%p1216_p8) target bundleno = 730 (0x2da), region = 36  ;;  %s1294_s30 = sand.u32 (!%p1216_p8), 1, %s1131_s16  }
  0x2d   : > { %s848_s12 = sshll.u32 (!%p1216_p8), %s1294_s30, 4  ;;  %s224_s24 = scalar_lea.sflag (!%p1216_p8), [#allocation3], %s1294_s30 }
  0x2e   : > { %s1300_s25 = scalar_lea.vmem (!%p1216_p8), [#allocation2], %s848_s12 }
  0x31   : > { %1110 = dma.done.wait (%p1203_p4), %s224_s24, 256  }
  0x32   : > { %1112 = vsyncadd (%p1203_p4), %s224_s24, 4294967040 }
  0x33   : > { %1114 = dma.done.wait (%p43_p1), [#allocation6], 12288  }
  0x34   : > { %1116 = vsyncadd (%p43_p1), [#allocation6], 4294955008 }
  0x35   : > { %1118 = dma.done.wait (%p43_p1), [#allocation9], 2048  }
  0x36   : > { %1120 = vsyncadd (%p43_p1), [#allocation9], 4294965248  ;;  %v399_v0 = vld [vmem:[#allocation5 + $0x178] sm:$0xff]  ;;  %v398_v1 = vld [vmem:[#allocation5 + $0x170] sm:$0xff]  ;;  %vm297_vm0 = vcmask 1046528   ;;  %vm290_vm1 = vcmask 1040384  }
  0x37   : > { %v336_v2 = vld [vmem:[#allocation5 + $0xf8] sm:$0xff]  ;;  %400 = vmatpush.msra.mxu2 %v399_v0  ;;  %v335_v4 = vld [vmem:[#allocation5 + $0xf0] sm:$0xff]  ;;  %v397_v5 = vld [vmem:[#allocation5 + $0x168] sm:$0xff]  ;;  %s859_s21 = sshll.u32 %s1194_s19, 4  ;;  %s267_s11 = scalar_lea.vmem [#allocation10], %s848_s12 }
  0x38   : > { %337 = vmatpush.msra.mxu0 %v336_v2  ;;  %v319_v3 = vld [vmem:[#allocation5 + $0x78] sm:$0xff]  ;;  %v318_v6 = vld [vmem:[#allocation5 + $0x70] sm:$0xff]  ;;  %v334_v7 = vld [vmem:[#allocation5 + $0xe8] sm:$0xff]  ;;  %s732_s8 = scalar_lea.hbm %s1483_s4, %s859_s21  ;;  %s733_s13 = sshll.u32 %s267_s11, 4  ;;  %s734_s13 = int_to_ptr.vmem [resolvable:$true] %s733_s13 }
  0x39   : > { %360 = vmatpush.msra.mxu1 %v319_v3  ;;  %401 = vmatpush.msra.mxu2 %v398_v1  ;;  %v317_v8 = vld [vmem:[#allocation5 + $0x68] sm:$0xff]  ;;  %v396_v9 = vld [vmem:[#allocation5 + $0x160] sm:$0xff]  ;;  %v395_v12 = vld [vmem:[#allocation5 + $0x158] sm:$0xff]  ;;  %s735_s14 = sshll.u32 %s732_s8, 4  ;;  %s721_s19 = scalar_lea.sflag [#allocation4], %s1294_s30  ;;  %s736_s14 = int_to_ptr.hbm [resolvable:$true] %s735_s14 }
  0x3a   : > { %338 = vmatpush.msra.mxu0 %v335_v4  ;;  %v333_v10 = vld [vmem:[#allocation5 + $0xe0] sm:$0xff]  ;;  %v332_v13 = vld [vmem:[#allocation5 + $0xd8] sm:$0xff]  ;;  %v394_v15 = vld [vmem:[#allocation5 + $0x150] sm:$0xff]  ;;  %s1079_s20 = sshra.s32 %s736_s14, 4  ;;  %s1085_s9 = scalar_lea.hbm %s1483_s4, 32  ;;  %s1080_s20 = int_to_ptr.hbm [resolvable:$true] %s1079_s20 }
  0x3b   : > { %361 = vmatpush.msra.mxu1 %v318_v6  ;;  %402 = vmatpush.msra.mxu2 %v397_v5  ;;  %v316_v11 = vld [vmem:[#allocation5 + $0x60] sm:$0xff]  ;;  %v315_v14 = vld [vmem:[#allocation5 + $0x58] sm:$0xff]  ;;  %v331_v16 = vld [vmem:[#allocation5 + $0xd0] sm:$0xff]  ;;  %s1081_s29 = scalar_lea.hbm %s1080_s20, 16  ;;  %p1086_p11 = scmp.lt.s32.totalorder %s1080_s20, %s1483_s4 }
  0x3c   : > { %339 = vmatpush.msra.mxu0 %v334_v7  ;;  %v314_v17 = vld [vmem:[#allocation5 + $0x50] sm:$0xff]  ;;  %v393_v18 = vld [vmem:[#allocation5 + $0x148] sm:$0xff]  ;;  %v392_v21 = vld [vmem:[#allocation5 + $0x140] sm:$0xff]  ;;  %p1082_p1 = scmp.ne.s32.totalorder %s1080_s20, %s1081_s29  ;;  %p1087_p9 = scmp.lt.s32.totalorder %s1085_s9, %s1081_s29 }
  0x3d   : > { %362 = vmatpush.msra.mxu1 %v317_v8  ;;  %403 = vmatpush.msra.mxu2 %v396_v9  ;;  %v330_v19 = vld [vmem:[#allocation5 + $0xc8] sm:$0xff]  ;;  %v329_v22 = vld [vmem:[#allocation5 + $0xc0] sm:$0xff]  ;;  %v391_v24 = vld [vmem:[#allocation5 + $0x138] sm:$0xff] }
  0x3e   : > { %340 = vmatpush.msra.mxu0 %v333_v10  ;;  %v313_v20 = vld [vmem:[#allocation5 + $0x48] sm:$0xff]  ;;  %v312_v23 = vld [vmem:[#allocation5 + $0x40] sm:$0xff]  ;;  %v328_v25 = vld [vmem:[#allocation5 + $0xb8] sm:$0xff]  ;;  %p1083_p4 = pnand %p1082_p1, %p1264_p3  ;;  %p1088_p2 = por %p1087_p9, %p1086_p11 }
  0x3f   : > { %363 = vmatpush.msra.mxu1 %v316_v11  ;;  %404 = vmatpush.msra.mxu2 %v395_v12  ;;  %v311_v26 = vld [vmem:[#allocation5 + $0x38] sm:$0xff]  ;;  %v390_v27 = vld [vmem:[#allocation5 + $0x130] sm:$0xff]  ;;  %v389_v32 = vld [vmem:[#allocation5 + $0x128] sm:$0xff] }
  0x40   : > { %341 = vmatpush.msra.mxu0 %v332_v13  ;;  %v327_v28 = vld [vmem:[#allocation5 + $0xb0] sm:$0xff]  ;;  %v1314_v29 = vld [vmem:[#allocation8 + $0x78] sm:$0xff]  ;;  %v326_v33 = vld [vmem:[#allocation5 + $0xa8] sm:$0xff]  ;;  %p1084_p8 = pneg %p1083_p4 }
  0x41   : > { %364 = vmatpush.msra.mxu1 %v315_v14  ;;  %405 = vmatpush.msra.mxu2 %v394_v15  ;;  %v310_v30 = vld [vmem:[#allocation5 + $0x30] sm:$0xff]  ;;  %v309_v34 = vld [vmem:[#allocation5 + $0x28] sm:$0xff]  ;;  %v388_v35 = vld [vmem:[#allocation5 + $0x120] sm:$0xff] }
  0x42   : > { %342 = vmatpush.msra.mxu0 %v331_v16  ;;  %v1316_v31 = vld [vmem:[#allocation8 + $0x70] sm:$0xff]  ;;  %441 = vmatpush.msra.mxu3 %v1314_v29  ;;  %v325_v36 = vld [vmem:[#allocation5 + $0xa0] sm:$0xff]  ;;  %v387_v37 = vld [vmem:[#allocation5 + $0x118] sm:$0xff]  ;;  %p1089_p10 = pnand %p1088_p2, %p1084_p8 }
  0x43   : > { %365 = vmatpush.msra.mxu1 %v314_v17  ;;  %406 = vmatpush.msra.mxu2 %v393_v18  ;;  %v308_v38 = vld [vmem:[#allocation5 + $0x20] sm:$0xff]  ;;  %v324_v39 = vld [vmem:[#allocation5 + $0x98] sm:$0xff]  ;;  %v386_v43 = vld [vmem:[#allocation5 + $0x110] sm:$0xff] }
  0x44   : > { %343 = vmatpush.msra.mxu0 %v330_v19  ;;  %442 = vmatpush.msra.mxu3 %v1316_v31  ;;  %v1321_v40 = vld [vmem:[%s1300_s25] sm:$0xff]  ;;  %v1324_v41 = vld [vmem:[%s1300_s25 + $0x8] sm:$0xff] }
  0x45   : > { %366 = vmatpush.msra.mxu1 %v313_v20  ;;  %407 = vmatpush.msra.mxu2 %v392_v21  ;;  %v307_v42 = vld [vmem:[#allocation5 + $0x18] sm:$0xff]  ;;  %v323_v44 = vld [vmem:[#allocation5 + $0x90] sm:$0xff]  ;;  %v287_v46 = vrot.slane %v1321_v40, 1  ;;  %v298_v47 = vrot.slane %v1324_v41, 1  ;;  %v385_v48 = vld [vmem:[#allocation5 + $0x108] sm:$0xff]  ;;  %v291_v50 = vrot.slane %v1321_v40, 7 }
  0x46   : > { %344 = vmatpush.msra.mxu0 %v329_v22  ;;  %v306_v45 = vld [vmem:[#allocation5 + $0x10] sm:$0xff]  ;;  %v322_v49 = vld [vmem:[#allocation5 + $0x88] sm:$0xff]  ;;  %v384_v52 = vld [vmem:[#allocation5 + $0x100] sm:$0xff]  ;;  %v292_v57 = vrot.slane %v1324_v41, 7 }
  0x47   : > { %367 = vmatpush.msra.mxu1 %v312_v23  ;;  %408 = vmatpush.msra.mxu2 %v391_v24  ;;  %v305_v51 = vld [vmem:[#allocation5 + $0x8] sm:$0xff]  ;;  %v321_v53 = vld [vmem:[#allocation5 + $0x80] sm:$0xff]  ;;  %v299_v54 = vsel %vm297_vm0, %v287_v46, %v298_v47  ;;  %v296_v56 = vsel %vm290_vm1, %v287_v46, %v291_v50  ;;  %v1346_v62 = vld [vmem:[#allocation8 + $0x58] sm:$0xff] }
  0x48   : > { %345 = vmatpush.msra.mxu0 %v328_v25  ;;  %v304_v55 = vld [vmem:[#allocation5] sm:$0xff]  ;;  %v303_v58 = vsel %vm297_vm0, %v298_v47, %v292_v57  ;;  %v293_v59 = vsel %vm290_vm1, %v291_v50, %v292_v57  ;;  %v1338_v60 = vld [vmem:[#allocation8 + $0x68] sm:$0xff]  ;;  %v1350_v63 = vld [vmem:[#allocation8 + $0x50] sm:$0xff] }
  0x49   : > { %368 = vmatpush.msra.mxu1 %v311_v26  ;;  %409 = vmatpush.msra.mxu2 %v390_v27  ;;  %v1342_v61 = vld [vmem:[#allocation8 + $0x60] sm:$0xff]  ;;  %v1353_v0 = vld [vmem:[#allocation8 + $0x48] sm:$0xff]  ;;  %v1362_v2 = vld [vmem:[#allocation8 + $0x38] sm:$0xff] }
  0x4a   : > { %346 = vmatpush.msra.mxu0 %v327_v28  ;;  %443 = vmatpush.msra.mxu3 %v1338_v60  ;;  %v1358_v1 = vld [vmem:[#allocation8 + $0x40] sm:$0xff]  ;;  %v1366_v3 = vld [vmem:[#allocation8 + $0x30] sm:$0xff]  ;;  %v1370_v4 = vld [vmem:[#allocation8 + $0x28] sm:$0xff] }
  0x4b   : > { %369 = vmatpush.msra.mxu1 %v310_v30  ;;  %410 = vmatpush.msra.mxu2 %v389_v32  ;;  %v1374_v5 = vld [vmem:[#allocation8 + $0x20] sm:$0xff]  ;;  %v1376_v6 = vld [vmem:[#allocation8 + $0x18] sm:$0xff]  ;;  %v1380_v7 = vld [vmem:[#allocation8 + $0x10] sm:$0xff] }
  0x4c   : > { %347 = vmatpush.msra.mxu0 %v326_v33  ;;  %444 = vmatpush.msra.mxu3 %v1342_v61  ;;  %v1384_v8 = vld [vmem:[#allocation8 + $0x8] sm:$0xff]  ;;  %v1388_v9 = vld [vmem:[#allocation8] sm:$0xff]  ;;  %v613_v46 = vld [vmem:[#allocation7 + $0x170] sm:$0xff] }
  0x4d   : > { %370 = vmatpush.msra.mxu1 %v309_v34  ;;  %411 = vmatpush.msra.mxu2 %v388_v35  ;;  %v548_v47 = vld [vmem:[#allocation7 + $0xe0] sm:$0xff]  ;;  %v547_v50 = vld [vmem:[#allocation7 + $0xd8] sm:$0xff]  ;;  %v529_v57 = vld [vmem:[#allocation7 + $0x50] sm:$0xff] }
  0x4e   : > { %348 = vmatpush.msra.mxu0 %v325_v36  ;;  %445 = vmatpush.msra.mxu3 %v1346_v62 }
  0x4f   : > { %371 = vmatpush.msra.mxu1 %v308_v38  ;;  %412 = vmatpush.msra.mxu2 %v387_v37  ;;  %v551_v38 = vld [vmem:[#allocation7 + $0xf8] sm:$0xff] }
  0x50   : > { %349 = vmatpush.msra.mxu0 %v324_v39  ;;  %446 = vmatpush.msra.mxu3 %v1350_v63  ;;  %v550_v39 = vld [vmem:[#allocation7 + $0xf0] sm:$0xff] }
  0x51   : > { %372 = vmatpush.msra.mxu1 %v307_v42  ;;  %413 = vmatpush.msra.mxu2 %v386_v43  ;;  %v534_v42 = vld [vmem:[#allocation7 + $0x78] sm:$0xff] }
  0x52   : > { %350 = vmatpush.msra.mxu0 %v323_v44  ;;  %447 = vmatpush.msra.mxu3 %v1353_v0  ;;  %v614_v43 = vld [vmem:[#allocation7 + $0x178] sm:$0xff]  ;;  %v549_v44 = vld [vmem:[#allocation7 + $0xe8] sm:$0xff] }
  0x53   : > { %373 = vmatpush.msra.mxu1 %v306_v45  ;;  %414 = vmatpush.msra.mxu2 %v385_v48  ;;  %v533_v45 = vld [vmem:[#allocation7 + $0x70] sm:$0xff]  ;;  %v532_v48 = vld [vmem:[#allocation7 + $0x68] sm:$0xff] }
  0x54   : > { %351 = vmatpush.msra.mxu0 %v322_v49  ;;  %448 = vmatpush.msra.mxu3 %v1358_v1  ;;  %v612_v49 = vld [vmem:[#allocation7 + $0x168] sm:$0xff] }
  0x55   : > { %374 = vmatpush.msra.mxu1 %v305_v51  ;;  %415 = vmatpush.msra.mxu2 %v384_v52  ;;  %v531_v51 = vld [vmem:[#allocation7 + $0x60] sm:$0xff] }
  0x56   : > { %352 = vmatpush.msra.mxu0 %v321_v53  ;;  %416 = vmatmul.f32.vlgmr.msra.gmra.mxu2 %v299_v54  ;;  %v611_v52 = vld [vmem:[#allocation7 + $0x160] sm:$0xff]  ;;  %v546_v53 = vld [vmem:[#allocation7 + $0xd0] sm:$0xff]  ;;  %v530_v54 = vld [vmem:[#allocation7 + $0x58] sm:$0xff] }
  0x57   : > { %375 = vmatpush.msra.mxu1 %v304_v55  ;;  %353 = vmatmul.f32.vlgmr.msra.gmra.mxu0 %v1321_v40  ;;  %v610_v55 = vld [vmem:[#allocation7 + $0x158] sm:$0xff] }
  0x58   : > { %376 = vmatmul.f32.vlgmr.msra.gmra.mxu1 %v296_v56  ;;  %461 = vmatpush.msrb.mxu0 %v1314_v29  ;;  %v545_v56 = vld [vmem:[#allocation7 + $0xc8] sm:$0xff] }
  0x59   : > { %449 = vmatpush.msra.mxu3 %v1362_v2  ;;  %552 = vmatpush.msrb.mxu1 %v551_v38 }
  0x5a   : > { %462 = vmatpush.msrb.mxu0 %v1316_v31  ;;  %575 = vmatpush.msrb.mxu2 %v534_v42  ;;  %v600_v42 = vld [vmem:[#allocation7 + $0x108] sm:$0xff] }
  0x5b   : > { %450 = vmatpush.msra.mxu3 %v1366_v3  ;;  %553 = vmatpush.msrb.mxu1 %v550_v39  ;;  %v520_v39 = vld [vmem:[#allocation7 + $0x8] sm:$0xff] }
  0x5c   : > { %463 = vmatpush.msrb.mxu0 %v1338_v60  ;;  %576 = vmatpush.msrb.mxu2 %v533_v45  ;;  %v599_v45 = vld [vmem:[#allocation7 + $0x100] sm:$0xff] }
  0x5d   : > { %451 = vmatpush.msra.mxu3 %v1370_v4  ;;  %554 = vmatpush.msrb.mxu1 %v549_v44  ;;  %v519_v44 = vld [vmem:[#allocation7] sm:$0xff] }
  0x5e   : > { %419 = vmatmul.f32.gmra.mxu2 %v303_v58  ;;  %464 = vmatpush.msrb.mxu0 %v1342_v61  ;;  %v609_v58 = vld [vmem:[#allocation7 + $0x150] sm:$0xff] }
  0x5f   : > { %356 = vmatmul.f32.gmra.mxu0 %v1324_v41  ;;  %452 = vmatpush.msra.mxu3 %v1374_v5 }
  0x60   : > { %379 = vmatmul.f32.gmra.mxu1 %v293_v59  ;;  %465 = vmatpush.msrb.mxu0 %v1346_v62  ;;  %v544_v59 = vld [vmem:[#allocation7 + $0xc0] sm:$0xff] }
  0x61   : > { %453 = vmatpush.msra.mxu3 %v1376_v6  ;;  %555 = vmatpush.msrb.mxu1 %v548_v47 }
  0x62   : > { %466 = vmatpush.msrb.mxu0 %v1350_v63  ;;  %577 = vmatpush.msrb.mxu2 %v532_v48 }
  0x63   : > { %454 = vmatpush.msra.mxu3 %v1380_v7  ;;  %556 = vmatpush.msrb.mxu1 %v547_v50 }
  0x64   : > { %467 = vmatpush.msrb.mxu0 %v1353_v0  ;;  %578 = vmatpush.msrb.mxu2 %v531_v51 }
  0x65   : > { %455 = vmatpush.msra.mxu3 %v1384_v8  ;;  %557 = vmatpush.msrb.mxu1 %v546_v53 }
  0x66   : > { %468 = vmatpush.msrb.mxu0 %v1358_v1  ;;  %579 = vmatpush.msrb.mxu2 %v530_v54 }
  0x67   : > { %456 = vmatpush.msra.mxu3 %v1388_v9  ;;  %558 = vmatpush.msrb.mxu1 %v545_v56 }
  0x68   : > { %469 = vmatpush.msrb.mxu0 %v1362_v2  ;;  %580 = vmatpush.msrb.mxu2 %v529_v57 }
  0x69   : > { %615 = vmatpush.msrb.mxu3 %v614_v43  ;;  %559 = vmatpush.msrb.mxu1 %v544_v59 }
  0x6a   : > { %470 = vmatpush.msrb.mxu0 %v1366_v3 }
  0x6b   : > { %616 = vmatpush.msrb.mxu3 %v613_v46 }
  0x6c   : > { %471 = vmatpush.msrb.mxu0 %v1370_v4 }
  0x6d   : > { %617 = vmatpush.msrb.mxu3 %v612_v49 }
  0x6e   : > { %472 = vmatpush.msrb.mxu0 %v1374_v5 }
  0x6f   : > { %618 = vmatpush.msrb.mxu3 %v611_v52 }
  0x70   : > { %473 = vmatpush.msrb.mxu0 %v1376_v6 }
  0x71   : > { %619 = vmatpush.msrb.mxu3 %v610_v55 }
  0x72   : > { %474 = vmatpush.msrb.mxu0 %v1380_v7 }
  0x73   : > { %620 = vmatpush.msrb.mxu3 %v609_v58 }
  0x74   : > { %475 = vmatpush.msrb.mxu0 %v1384_v8 }
  0x76   : > { %476 = vmatpush.msrb.mxu0 %v1388_v9 }
  0x78   : > { %656 = vmatpush.msra.mxu0 %v1314_v29 }
  0x7a   : > { %657 = vmatpush.msra.mxu0 %v1316_v31 }
  0x7c   : > { %658 = vmatpush.msra.mxu0 %v1338_v60 }
  0x7e   : > { %659 = vmatpush.msra.mxu0 %v1342_v61 }
  0x80   : > { %660 = vmatpush.msra.mxu0 %v1346_v62 }
  0x82   : > { %661 = vmatpush.msra.mxu0 %v1350_v63 }
  0x84   : > { %662 = vmatpush.msra.mxu0 %v1353_v0 }
  0x86   : > { %663 = vmatpush.msra.mxu0 %v1358_v1 }
  0x88   : > { %664 = vmatpush.msra.mxu0 %v1362_v2 }
  0x8a   : > { %665 = vmatpush.msra.mxu0 %v1366_v3 }
  0x8c   : > { %666 = vmatpush.msra.mxu0 %v1370_v4 }
  0x8e   : > { %667 = vmatpush.msra.mxu0 %v1374_v5 }
  0x90   : > { %668 = vmatpush.msra.mxu0 %v1376_v6 }
  0x92   : > { %669 = vmatpush.msra.mxu0 %v1380_v7 }
  0x94   : > { %670 = vmatpush.msra.mxu0 %v1384_v8 }
  0x96   : > { %671 = vmatpush.msra.mxu0 %v1388_v9 }
  0xd4   : > { %v354_v10 = vpop.f32.mrf.mxu0 }
  0xd5   : > { %v377_v11 = vpop.f32.mrf.mxu1 }
  0xd6   : > { %v378_v13 = vadd.f32 %v377_v11, %v354_v10  ;;  %v528_v10 = vld [vmem:[#allocation7 + $0x48] sm:$0xff] }
  0xd7   : > { %v608_v11 = vld [vmem:[#allocation7 + $0x148] sm:$0xff]  ;;  %581 = vmatpush.msrb.mxu2 %v528_v10 }
  0xd8   : > { %621 = vmatpush.msrb.mxu3 %v608_v11 }
  0xd9   : > { %v417_v12 = vpop.f32.mrf.mxu2 }
  0xda   : > { %v1401_v17 = vadd.f32 %v417_v12, %v378_v13  ;;  %v543_v12 = vld [vmem:[#allocation7 + $0xb8] sm:$0xff]  ;;  %v527_v13 = vld [vmem:[#allocation7 + $0x40] sm:$0xff] }
  0xdb   : > { %560 = vmatpush.msrb.mxu1 %v543_v12  ;;  %582 = vmatpush.msrb.mxu2 %v527_v13 }
  0xdc   : > { %v357_v14 = vpop.f32.mrf.mxu0  ;;  %v432_v20 = vmul.f32 %v1401_v17, %v1401_v17 }
  0xdd   : > { %v380_v15 = vpop.f32.mrf.mxu1 }
  0xde   : > { %v381_v16 = vadd.f32 %v380_v15, %v357_v14  ;;  %v607_v14 = vld [vmem:[#allocation7 + $0x140] sm:$0xff]  ;;  %v542_v15 = vld [vmem:[#allocation7 + $0xb0] sm:$0xff] }
  0xdf   : > { %622 = vmatpush.msrb.mxu3 %v607_v14  ;;  %561 = vmatpush.msrb.mxu1 %v542_v15 }
  0xe1   : > { %v420_v18 = vpop.f32.mrf.mxu2 }
  0xe2   : > { %v1404_v19 = vadd.f32 %v420_v18, %v381_v16  ;;  %v526_v16 = vld [vmem:[#allocation7 + $0x38] sm:$0xff] }
  0xe3   : > { %v606_v18 = vld [vmem:[#allocation7 + $0x138] sm:$0xff]  ;;  %583 = vmatpush.msrb.mxu2 %v526_v16 }
  0xe4   : > { %v425_v21 = vadd.f32 %v1404_v19, %v1401_v17  ;;  %v433_v22 = vmul.f32 %v1404_v19, %v1404_v19  ;;  %623 = vmatpush.msrb.mxu3 %v606_v18 }
  0xe6   : > { %v426_v23 = vrot.slane %v425_v21, 4  ;;  %v434_v24 = vadd.f32 %v433_v22, %v432_v20  ;;  %v541_v20 = vld [vmem:[#allocation7 + $0xa8] sm:$0xff]  ;;  %v605_v22 = vld [vmem:[#allocation7 + $0x130] sm:$0xff] }
  0xe7   : > { %562 = vmatpush.msrb.mxu1 %v541_v20  ;;  %624 = vmatpush.msrb.mxu3 %v605_v22 }
  0xe8   : > { %v435_v25 = vrot.slane %v434_v24, 4  ;;  %v427_v26 = vadd.f32 %v426_v23, %v425_v21  ;;  %v525_v21 = vld [vmem:[#allocation7 + $0x30] sm:$0xff]  ;;  %v540_v23 = vld [vmem:[#allocation7 + $0xa0] sm:$0xff] }
  0xe9   : > { %584 = vmatpush.msrb.mxu2 %v525_v21  ;;  %563 = vmatpush.msrb.mxu1 %v540_v23 }
  0xea   : > { %v428_v27 = vrot.slane %v427_v26, 2  ;;  %v436_v28 = vadd.f32 %v435_v25, %v434_v24  ;;  %v524_v24 = vld [vmem:[#allocation7 + $0x28] sm:$0xff] }
  0xeb   : > { %v604_v25 = vld [vmem:[#allocation7 + $0x128] sm:$0xff]  ;;  %585 = vmatpush.msrb.mxu2 %v524_v24 }
  0xec   : > { %v429_v30 = vadd.f32 %v428_v27, %v427_v26  ;;  %v437_v32 = vrot.slane %v436_v28, 2  ;;  %625 = vmatpush.msrb.mxu3 %v604_v25  ;;  %v539_v26 = vld [vmem:[#allocation7 + $0x98] sm:$0xff]  ;;  %v523_v27 = vld [vmem:[#allocation7 + $0x20] sm:$0xff] }
  0xed   : > { %564 = vmatpush.msrb.mxu1 %v539_v26  ;;  %586 = vmatpush.msrb.mxu2 %v523_v27 }
  0xee   : > { %v430_v33 = vrot.slane %v429_v30, 1  ;;  %v438_v34 = vadd.f32 %v437_v32, %v436_v28  ;;  %v603_v28 = vld [vmem:[#allocation7 + $0x120] sm:$0xff]  ;;  %v522_v32 = vld [vmem:[#allocation7 + $0x18] sm:$0xff] }
  0xef   : > { %626 = vmatpush.msrb.mxu3 %v603_v28  ;;  %587 = vmatpush.msrb.mxu2 %v522_v32 }
  0xf0   : > { %v431_v35 = vadd.f32 %v430_v33, %v429_v30  ;;  %v439_v36 = vrot.slane %v438_v34, 1  ;;  %v538_v30 = vld [vmem:[#allocation7 + $0x90] sm:$0xff]  ;;  %v602_v33 = vld [vmem:[#allocation7 + $0x118] sm:$0xff] }
  0xf1   : > { %565 = vmatpush.msrb.mxu1 %v538_v30  ;;  %627 = vmatpush.msrb.mxu3 %v602_v33 }
  0xf2   : > { %457 = vmatmul.f32.vlgmr.msra.gmra.mxu3 %v431_v35  ;;  %v440_v37 = vadd.f32 %v439_v36, %v438_v34  ;;  %v537_v34 = vld [vmem:[#allocation7 + $0x88] sm:$0xff]  ;;  %v521_v35 = vld [vmem:[#allocation7 + $0x10] sm:$0xff] }
  0xf3   : > { %566 = vmatpush.msrb.mxu1 %v537_v34  ;;  %v601_v36 = vld [vmem:[#allocation7 + $0x110] sm:$0xff]  ;;  %588 = vmatpush.msrb.mxu2 %v521_v35 }
  0xf4   : > { %477 = vmatmul.f32.vlgmr.msrb.gmra.mxu0 %v440_v37  ;;  %628 = vmatpush.msrb.mxu3 %v601_v36  ;;  %v536_v37 = vld [vmem:[#allocation7 + $0x80] sm:$0xff] }
  0xf5   : > { %567 = vmatpush.msrb.mxu1 %v536_v37  ;;  %589 = vmatpush.msrb.mxu2 %v520_v39 }
  0xf6   : > { %629 = vmatpush.msrb.mxu3 %v600_v42 }
  0xf7   : > { %676 = vmatpush.msra.mxu1 %v1314_v29  ;;  %590 = vmatpush.msrb.mxu2 %v519_v44 }
  0xf8   : > { %630 = vmatpush.msrb.mxu3 %v599_v45 }
  0xf9   : > { %677 = vmatpush.msra.mxu1 %v1316_v31 }
  0xfb   : > { %678 = vmatpush.msra.mxu1 %v1338_v60 }
  0xfd   : > { %679 = vmatpush.msra.mxu1 %v1342_v61 }
  0xff   : > { %680 = vmatpush.msra.mxu1 %v1346_v62 }
 0x101   : > { %681 = vmatpush.msra.mxu1 %v1350_v63 }
 0x103   : > { %682 = vmatpush.msra.mxu1 %v1353_v0 }
 0x105   : > { %683 = vmatpush.msra.mxu1 %v1358_v1 }
 0x107   : > { %684 = vmatpush.msra.mxu1 %v1362_v2 }
 0x109   : > { %685 = vmatpush.msra.mxu1 %v1366_v3 }
 0x10b   : > { %686 = vmatpush.msra.mxu1 %v1370_v4 }
 0x10d   : > { %687 = vmatpush.msra.mxu1 %v1374_v5 }
 0x10f   : > { %688 = vmatpush.msra.mxu1 %v1376_v6 }
 0x111   : > { %689 = vmatpush.msra.mxu1 %v1380_v7 }
 0x113   : > { %690 = vmatpush.msra.mxu1 %v1384_v8 }
 0x115   : > { %691 = vmatpush.msra.mxu1 %v1388_v9 }
 0x171   : > { %v478_v46 = vpop.f32.mrf.mxu0 }
 0x175   : > { %v458_v38 = vpop.f32.mrf.mxu3 }
 0x176   : > { %v481_v43 = vmul.f32 %v458_v38, %v458_v38  ;;  %v495_v61 = vperm.slane %v458_v38, 0 }
 0x178   : > { %v482_v47 = vsub.f32 %v478_v46, %v481_v43  ;;  %v496_v0 = vsub.f32 %v1401_v17, %v495_v61  ;;  %v497_v1 = vsub.f32 %v1404_v19, %v495_v61 }
 0x17a   : > { %v483_v48 = vmax.f32 %v482_v47, 0.0 }
 0x17c   : > { %v484_v49 = vadd.f32 1e-05, %v483_v48 }
 0x17e   : > { %941 = vrsqrt.f32 %v484_v49  ;;  %vm491_vm3 = vweird.f32 %v484_v49 }
 0x184   : > { %v942_v50 = vpop.eup %941 }
 0x185   : > { %v486_v29 = vmul.f32 %v942_v50, %v484_v49  ;;  %vm492_vm2 = vweird.f32 %v942_v50 }
 0x186   : > { %vm493_vm4 = vmor %vm491_vm3, %vm492_vm2 }
 0x187   : > { %v487_v51 = vmul.f32 %v942_v50, %v486_v29 }
 0x189   : > { %v488_v31 = vmul.f32 0.5, %v487_v51 }
 0x18b   : > { %v489_v60 = vsub.f32 1.5, %v488_v31 }
 0x18d   : > { %v490_v62 = vmul.f32 %v942_v50, %v489_v60 }
 0x18f   : > { %v494_v63 = vsel %vm493_vm4, %v942_v50, %v490_v62 }
 0x190   : > { %v498_v2 = vperm.slane %v494_v63, 0 }
 0x192   : > { %v500_v3 = vmul.f32 %v498_v2, %v497_v1  ;;  %v499_v52 = vmul.f32 %v498_v2, %v496_v0 }
 0x194   : > { %v502_v4 = vmax.f32 %v500_v3, 0.0  ;;  %v501_v53 = vmax.f32 %v499_v52, 0.0 }
 0x196   : > { %568 = vmatmul.f32.vlgmr.msrb.gmra.mxu1 %v501_v53  ;;  %v504_v5 = vrot.slane %v501_v53, 1  ;;  %v507_v54 = vrot.slane %v501_v53, 7  ;;  %v513_v55 = vrot.slane %v502_v4, 1  ;;  %v508_v19 = vrot.slane %v502_v4, 7 }
 0x198   : > { %v512_v6 = vsel %vm290_vm1, %v504_v5, %v507_v54  ;;  %v514_v17 = vsel %vm297_vm0, %v504_v5, %v513_v55  ;;  %v509_v7 = vsel %vm290_vm1, %v507_v54, %v508_v19  ;;  %v518_v8 = vsel %vm297_vm0, %v513_v55, %v508_v19 }
 0x199   : > { %591 = vmatmul.f32.vlgmr.msrb.gmra.mxu2 %v512_v6  ;;  %631 = vmatmul.f32.vlgmr.msrb.gmra.mxu3 %v514_v17 }
 0x19e   : > { %571 = vmatmul.f32.gmra.mxu1 %v502_v4 }
 0x1a1   : > { %594 = vmatmul.f32.gmra.mxu2 %v509_v7  ;;  %634 = vmatmul.f32.gmra.mxu3 %v518_v8 }
 0x213   : > { %v569_v56 = vpop.f32.mrf.mxu1 }
 0x21b   : > { %v572_v59 = vpop.f32.mrf.mxu1 }
 0x21c   : > { %v592_v9 = vpop.f32.mrf.mxu2  ;;  %v632_v57 = vpop.f32.mrf.mxu3 }
 0x21d   : > { %v593_v58 = vadd.f32 %v592_v9, %v569_v56 }
 0x21f   : > { %v638_v11 = vadd.f32 %v632_v57, %v593_v58 }
 0x221   : > { %v647_v15 = vmul.f32 %v638_v11, %v638_v11 }
 0x224   : > { %v595_v10 = vpop.f32.mrf.mxu2  ;;  %v635_v13 = vpop.f32.mrf.mxu3 }
 0x225   : > { %v596_v12 = vadd.f32 %v595_v10, %v572_v59 }
 0x227   : > { %v639_v14 = vadd.f32 %v635_v13, %v596_v12 }
 0x229   : > { %v640_v16 = vadd.f32 %v639_v14, %v638_v11  ;;  %v648_v18 = vmul.f32 %v639_v14, %v639_v14 }
 0x22b   : > { %v641_v20 = vrot.slane %v640_v16, 4  ;;  %v649_v21 = vadd.f32 %v648_v18, %v647_v15 }
 0x22d   : > { %v642_v22 = vadd.f32 %v641_v20, %v640_v16  ;;  %v650_v23 = vrot.slane %v649_v21, 4 }
 0x22f   : > { %v643_v24 = vrot.slane %v642_v22, 2  ;;  %v651_v25 = vadd.f32 %v650_v23, %v649_v21 }
 0x231   : > { %v644_v26 = vadd.f32 %v643_v24, %v642_v22  ;;  %v652_v27 = vrot.slane %v651_v25, 2 }
 0x233   : > { %v645_v28 = vrot.slane %v644_v26, 1  ;;  %v653_v30 = vadd.f32 %v652_v27, %v651_v25 }
 0x235   : > { %v646_v32 = vadd.f32 %v645_v28, %v644_v26  ;;  %v654_v33 = vrot.slane %v653_v30, 1 }
 0x237   : > { %672 = vmatmul.f32.vlgmr.msra.gmra.mxu0 %v646_v32  ;;  %v655_v34 = vadd.f32 %v654_v33, %v653_v30 }
 0x239   : > { %692 = vmatmul.f32.vlgmr.msra.gmra.mxu1 %v655_v34 }
 0x2b4   : > { %v673_v35 = vpop.f32.mrf.mxu0 }
 0x2b5   : > { %v696_v36 = vmul.f32 %v673_v35, %v673_v35  ;;  %v710_v48 = vperm.slane %v673_v35, 0 }
 0x2b6   : > { %v693_v37 = vpop.f32.mrf.mxu1 }
 0x2b7   : > { %v697_v38 = vsub.f32 %v693_v37, %v696_v36  ;;  %v711_v29 = vsub.f32 %v638_v11, %v710_v48  ;;  %v712_v51 = vsub.f32 %v639_v14, %v710_v48 }
 0x2b9   : > { %v698_v39 = vmax.f32 %v697_v38, 0.0 }
 0x2bb   : > { %v699_v42 = vadd.f32 1e-05, %v698_v39 }
 0x2bd   : > { %943 = vrsqrt.f32 %v699_v42  ;;  %vm706_vm6 = vweird.f32 %v699_v42 }
 0x2c3   : > { %v944_v43 = vpop.eup %943 }
 0x2c4   : > { %v701_v44 = vmul.f32 %v944_v43, %v699_v42  ;;  %vm707_vm5 = vweird.f32 %v944_v43 }
 0x2c5   : > { %vm708_vm7 = vmor %vm706_vm6, %vm707_vm5 }
 0x2c6   : > { %v702_v45 = vmul.f32 %v944_v43, %v701_v44 }
 0x2c8   : > { %v703_v46 = vmul.f32 0.5, %v702_v45 }
 0x2ca   : > { %v704_v47 = vsub.f32 1.5, %v703_v46 }
 0x2cc   : > { %v705_v49 = vmul.f32 %v944_v43, %v704_v47 }
 0x2ce   : > { %v709_v50 = vsel %vm708_vm7, %v944_v43, %v705_v49 }
 0x2cf   : > { %v713_v31 = vperm.slane %v709_v50, 0 }
 0x2d1   : > { %v714_v60 = vmul.f32 %v713_v31, %v711_v29  ;;  %v715_v61 = vmul.f32 %v713_v31, %v712_v51 }
 0x2d3   : > { %v716_v62 = vadd.f32 %v714_v60, %v1321_v40  ;;  %v717_v63 = vadd.f32 %v715_v61, %v1324_v41 }
 0x2d5   : > { %718 = vst [vmem:[%s267_s11] sm:$0xff] %v716_v62 }
 0x2d6   : > { %719 = vst [vmem:[%s267_s11 + $0x8] sm:$0xff] %v717_v63 }
 0x2d7   : > { %1092 = shalt.err (!%p1089_p10)
}
 0x2d8   : > { %s1146_s30 = smov 128   ;;  %s1147_s24 = smov 8  }
 0x2d9   : > { %874 = dma.vmem_to_hbm [thread:$0]  (%p1264_p3), %s734_s13, 256, %s736_s14, %s721_s19, %s1146_s30, %s1146_s30, %s1147_s24  }
 0x2da PF: > { %s750_s25 = sand.u32 1, %s1127_s15   ;;  %p1490_p12 = scmp.ge.s32.totalorder %s1139_s18, 2 }
 0x2db   : > { %s751_s21 = scalar_lea.sflag [#allocation4], %s750_s25 }
 0x2dc   : > { %p891_p13 = pnand %p1490_p12, %p1208_p6 }
 0x2de   : > { %p892_p0 = pneg %p891_p13 }
 0x2e0   : > { %1122 = dma.done.wait (%p892_p0), %s751_s21, 256  }
 0x2e1   : > { %1124 = vsyncadd (%p892_p0), %s751_s21, 4294967040  ;;  %p19_p5 = scmp.ge.s32.totalorder %s1246_s23, 4   ;;  %s1491_s15 = smov %s1131_s16 }
 0x2e2   : > { %s1492_s16 = smov %s1135_s17  ;;  %s1493_s17 = smov %s1260_s27 }
 0x2e3   : > { %s1494_s18 = smov %s1246_s23  ;;  %21 = sbr.rel (!%p19_p5) target bundleno = 7 (0x7), region = 97 }
 0x2e8   :  { %757 = vsyncpa [#allocation3], 1 }
 0x2e9   :  { %759 = vsyncpa [#allocation3 + $0x1], 1 }
 0x2ea   :  { %760 = vsyncpa [#allocation6], 1 }
 0x2eb   :  { %761 = vsyncpa [#allocation9], 1 }
 0x2ec   :  { %762 = vsyncpa [#allocation4], 1 }
 0x2ed   :  { %764 = vsyncpa [#allocation4 + $0x1], 1 }

</bundles_post_ra>
